<compile_context>
chip_gen: v6e
topology: v6e:2x2x1
jax: 0.10.0
libtpu: 0.0.40
codegen_flags: <defaults>
</compile_context>

<pallas_src>
import functools

import jax
import jax.numpy as jnp
from jax.experimental import pallas as pl
from jax.experimental.pallas import tpu as pltpu


# ----------------------------------------------------------------------------
# Pallas kernel: fused GRUCell forward (PyTorch semantics), two minimal dots.
#   gi = x @ Wih^T + b_ih                    # (B, 3H) cols [i_r | i_z | i_n]
#   gh = h @ Whh^T + b_hh                    # (B, 3H) cols [h_r | h_z | h_n]
#   r  = sigmoid(i_r + h_r)
#   z  = sigmoid(i_z + h_z)
#   n  = tanh(i_n + r * h_n)                 # b_hn correctly inside r * (...)
#   h' = (1 - z) * n + z * h
# ----------------------------------------------------------------------------
def _gru_cell_kernel(x_ref, h_ref, wx_ref, wh_ref, b_ref, out_ref, *, hidden_size):
    H = hidden_size
    h = h_ref[...].astype(jnp.float32)                       # (B, H)
    b = b_ref[...].astype(jnp.float32)                       # (2, 3H)

    # Two MXU passes, native input dtypes, f32 accumulation.
    gi = jnp.dot(x_ref[...], wx_ref[...],
                 preferred_element_type=jnp.float32) + b[0:1, :]   # (B, 3H)
    gh = jnp.dot(h_ref[...], wh_ref[...],
                 preferred_element_type=jnp.float32) + b[1:2, :]   # (B, 3H)

    r = jax.nn.sigmoid(gi[:, 0:H] + gh[:, 0:H])
    z = jax.nn.sigmoid(gi[:, H:2 * H] + gh[:, H:2 * H])
    n = jnp.tanh(gi[:, 2 * H:3 * H] + r * gh[:, 2 * H:3 * H])
    h_new = (1.0 - z) * n + z * h
    out_ref[...] = h_new.astype(out_ref.dtype)


@jax.jit
def _gru_cell_pallas(x, h, w_x, w_h, b2):
    """Fused GRUCell forward.

    x: (B, I), h: (B, H), w_x: (I, 3H) = Wih^T, w_h: (H, 3H) = Whh^T,
    b2: (2, 3H) = [bias_ih; bias_hh].
    """
    B, _ = x.shape
    _, H = h.shape
    kernel = functools.partial(_gru_cell_kernel, hidden_size=H)
    # No grid: the whole (tiny) operands are VMEM-resident; nothing to iterate
    # or pipeline, so we skip the grid loop / double-buffering machinery.
    return pl.pallas_call(
        kernel,
        out_shape=jax.ShapeDtypeStruct((B, H), h.dtype),
        in_specs=[
            pl.BlockSpec(memory_space=pltpu.MemorySpace.VMEM),   # x
            pl.BlockSpec(memory_space=pltpu.MemorySpace.VMEM),   # h
            pl.BlockSpec(memory_space=pltpu.MemorySpace.VMEM),   # w_x
            pl.BlockSpec(memory_space=pltpu.MemorySpace.VMEM),   # w_h
            pl.BlockSpec(memory_space=pltpu.MemorySpace.VMEM),   # b2
        ],
        out_specs=pl.BlockSpec(memory_space=pltpu.MemorySpace.VMEM),
    )(x, h, w_x, w_h, b2)


# ----------------------------------------------------------------------------
# The wrapped "nn.Module": a GRUCell whose forward is the Pallas kernel.
# Parameter init matches PyTorch's U(-1/sqrt(H), 1/sqrt(H)).  Kernel-layout
# parameters (transposed weights, stacked bias) are built ONCE here -- no
# per-call transpose / reshape / concat anywhere in the call path.
# ----------------------------------------------------------------------------
class GRUCellPallas:
    def __init__(self, input_size, hidden_size, key):
        self.input_size = input_size
        self.hidden_size = hidden_size
        I, H = input_size, hidden_size
        k = 1.0 / jnp.sqrt(hidden_size)
        k1, k2, k3, k4 = jax.random.split(key, 4)
        # PyTorch-layout parameters (kept for reference / state_dict parity).
        self.weight_ih = jax.random.uniform(k1, (3 * H, I), jnp.float32, -k, k)
        self.weight_hh = jax.random.uniform(k2, (3 * H, H), jnp.float32, -k, k)
        self.bias_ih = jax.random.uniform(k3, (3 * H,), jnp.float32, -k, k)
        self.bias_hh = jax.random.uniform(k4, (3 * H,), jnp.float32, -k, k)

        # --- kernel-layout parameters, built once at construction ---
        self.w_x = self.weight_ih.T                               # (I, 3H)
        self.w_h = self.weight_hh.T                               # (H, 3H)
        self.b2 = jnp.stack([self.bias_ih, self.bias_hh], axis=0)  # (2, 3H)

    def __call__(self, x, h):
        return _gru_cell_pallas(x, h, self.w_x, self.w_h, self.b2)


# ----------------------------------------------------------------------------
# TensorDictModule: reads in_keys from a dict ("tensordict"), calls the module,
# writes out_keys back.  Also supports dispatch-style kwargs calling which
# returns the output tensor(s) directly (single tensor if one out_key).
# The TensorDict container semantics themselves are host-side Python glue.
# ----------------------------------------------------------------------------
class TensorDictModule:
    def __init__(self, module, in_keys, out_keys):
        if not callable(module):
            raise ValueError(f"Module {module} is not callable.")
        self.module = module
        self.in_keys = list(in_keys)
        self.out_keys = list(out_keys)

    def _forward_td(self, tensordict, tensordict_out=None):
        tensors = tuple(tensordict.get(k, None) for k in self.in_keys)
        if any(t is None for t in tensors):
            missing = {k for k, t in zip(self.in_keys, tensors) if t is None}
            raise KeyError(f"Missing inputs in tensordict: {missing}")
        out = self.module(*tensors)
        if not isinstance(out, tuple):
            out = (out,)
        if tensordict_out is None:
            tensordict_out = tensordict
        for k, t in zip(self.out_keys, out):
            if k != "_":
                tensordict_out[k] = t
        return tensordict_out

    def __call__(self, tensordict=None, **kwargs):
        if tensordict is not None:
            # stateful / tensordict call: return the (updated) tensordict
            return self._forward_td(dict(tensordict))
        # dispatch: build tensordict from kwargs, return out tensors directly
        td = {}
        for key in self.in_keys:
            if key not in kwargs:
                raise KeyError(
                    f"The key {key} wasn't found in the keyword arguments "
                    f"but is expected to execute that function.")
            td[key] = kwargs.pop(key)
        td = self._forward_td(td)
        outs = tuple(td[k] for k in self.out_keys)
        return outs[0] if len(outs) == 1 else outs


# Pure-JAX reference of the GRUCell (PyTorch semantics), for correctness check.
def _gru_ref(x, h, w_ih, w_hh, b_ih, b_hh):
    H = h.shape[-1]
    gi = x @ w_ih.T + b_ih
    gh = h @ w_hh.T + b_hh
    i_r, i_z, i_n = gi[:, :H], gi[:, H:2 * H], gi[:, 2 * H:]
    h_r, h_z, h_n = gh[:, :H], gh[:, H:2 * H], gh[:, 2 * H:]
    r = jax.nn.sigmoid(i_r + h_r)
    z = jax.nn.sigmoid(i_z + h_z)
    n = jnp.tanh(i_n + r * h_n)
    return (1.0 - z) * n + z * h


if __name__ == "__main__":
    key = jax.random.PRNGKey(0)
    k_mod, k_in, k_hid = jax.random.split(key, 3)

    batch, input_size, hidden_size = 3, 4, 8
    x = jax.random.normal(k_in, (batch, input_size), jnp.float32)
    h = jax.random.normal(k_hid, (batch, hidden_size), jnp.float32)

    gru = GRUCellPallas(input_size, hidden_size, k_mod)
    td_module = TensorDictModule(
        module=gru, in_keys=["input", "hidden"], out_keys=["output"])

    # stateful / tensordict-style call
    td = {"input": x, "hidden": h}
    td_out = td_module(td)
    out = jax.block_until_ready(td_out["output"])

    # dispatch-style call (kwargs -> single output tensor)
    out_dispatch = jax.block_until_ready(td_module(input=x, hidden=h))

    ref = _gru_ref(x, h, gru.weight_ih, gru.weight_hh, gru.bias_ih, gru.bias_hh)
    assert out.shape == (batch, hidden_size)
    assert out.dtype == h.dtype
    assert jnp.allclose(out, ref, atol=1e-5, rtol=1e-5)
    assert jnp.allclose(out_dispatch, ref, atol=1e-5, rtol=1e-5)

    print("KERNEL_OK")
</pallas_src>

<mosaic_0001>
module attributes {stable_mosaic.version = 11 : i64} {
  func.func @_gru_cell_kernel(%arg0: memref<3x4xf32, #tpu.memory_space<vmem>>, %arg1: memref<3x8xf32, #tpu.memory_space<vmem>>, %arg2: memref<4x24xf32, #tpu.memory_space<vmem>>, %arg3: memref<8x24xf32, #tpu.memory_space<vmem>>, %arg4: memref<2x24xf32, #tpu.memory_space<vmem>>, %arg5: memref<3x8xf32, #tpu.memory_space<vmem>>) attributes {dimension_semantics = [], scalar_prefetch = 0 : i64, scratch_operands = 0 : i64, tpu.core_type = #tpu.core_type<tc>} {
    %c0 = arith.constant 0 : index
    %c0_0 = arith.constant 0 : index
    %0 = vector.load %arg1[%c0, %c0_0] : memref<3x8xf32, #tpu.memory_space<vmem>>, vector<3x8xf32>
    %c0_1 = arith.constant 0 : index
    %c0_2 = arith.constant 0 : index
    %1 = vector.load %arg4[%c0_1, %c0_2] : memref<2x24xf32, #tpu.memory_space<vmem>>, vector<2x24xf32>
    %c0_3 = arith.constant 0 : index
    %c0_4 = arith.constant 0 : index
    %2 = vector.load %arg0[%c0_3, %c0_4] : memref<3x4xf32, #tpu.memory_space<vmem>>, vector<3x4xf32>
    %c0_5 = arith.constant 0 : index
    %c0_6 = arith.constant 0 : index
    %3 = vector.load %arg2[%c0_5, %c0_6] : memref<4x24xf32, #tpu.memory_space<vmem>>, vector<4x24xf32>
    %cst = arith.constant dense<0.000000e+00> : vector<3x24xf32>
    %4 = tpu.matmul %2, %3, %cst {dimension_numbers = #tpu.dot_dimension_numbers<[1], [0], [0], [1], [0, 0, 1, 1], [], []>} : vector<3x4xf32>, vector<4x24xf32>, vector<3x24xf32> -> vector<3x24xf32>
    %5 = vector.extract_strided_slice %1 {offsets = [0, 0], sizes = [1, 24], strides = [1, 1]} : vector<2x24xf32> to vector<1x24xf32>
    %6 = vector.broadcast %5 : vector<1x24xf32> to vector<3x24xf32>
    %7 = arith.addf %4, %6 : vector<3x24xf32>
    %c0_7 = arith.constant 0 : index
    %c0_8 = arith.constant 0 : index
    %8 = vector.load %arg1[%c0_7, %c0_8] : memref<3x8xf32, #tpu.memory_space<vmem>>, vector<3x8xf32>
    %c0_9 = arith.constant 0 : index
    %c0_10 = arith.constant 0 : index
    %9 = vector.load %arg3[%c0_9, %c0_10] : memref<8x24xf32, #tpu.memory_space<vmem>>, vector<8x24xf32>
    %cst_11 = arith.constant dense<0.000000e+00> : vector<3x24xf32>
    %10 = tpu.matmul %8, %9, %cst_11 {dimension_numbers = #tpu.dot_dimension_numbers<[1], [0], [0], [1], [0, 0, 1, 1], [], []>} : vector<3x8xf32>, vector<8x24xf32>, vector<3x24xf32> -> vector<3x24xf32>
    %11 = vector.extract_strided_slice %1 {offsets = [1, 0], sizes = [1, 24], strides = [1, 1]} : vector<2x24xf32> to vector<1x24xf32>
    %12 = vector.broadcast %11 : vector<1x24xf32> to vector<3x24xf32>
    %13 = arith.addf %10, %12 : vector<3x24xf32>
    %14 = vector.extract_strided_slice %7 {offsets = [0, 0], sizes = [3, 8], strides = [1, 1]} : vector<3x24xf32> to vector<3x8xf32>
    %15 = vector.extract_strided_slice %13 {offsets = [0, 0], sizes = [3, 8], strides = [1, 1]} : vector<3x24xf32> to vector<3x8xf32>
    %16 = arith.addf %14, %15 : vector<3x8xf32>
    %17 = arith.negf %16 : vector<3x8xf32>
    %18 = math.exp %17 : vector<3x8xf32>
    %cst_12 = arith.constant 1.000000e+00 : f32
    %19 = vector.broadcast %cst_12 : f32 to vector<3x8xf32>
    %20 = arith.addf %19, %18 : vector<3x8xf32>
    %21 = arith.divf %19, %20 : vector<3x8xf32>
    %22 = vector.extract_strided_slice %7 {offsets = [0, 8], sizes = [3, 8], strides = [1, 1]} : vector<3x24xf32> to vector<3x8xf32>
    %23 = vector.extract_strided_slice %13 {offsets = [0, 8], sizes = [3, 8], strides = [1, 1]} : vector<3x24xf32> to vector<3x8xf32>
    %24 = arith.addf %22, %23 : vector<3x8xf32>
    %25 = arith.negf %24 : vector<3x8xf32>
    %26 = math.exp %25 : vector<3x8xf32>
    %cst_13 = arith.constant 1.000000e+00 : f32
    %27 = vector.broadcast %cst_13 : f32 to vector<3x8xf32>
    %28 = arith.addf %27, %26 : vector<3x8xf32>
    %29 = arith.divf %27, %28 : vector<3x8xf32>
    %30 = vector.extract_strided_slice %7 {offsets = [0, 16], sizes = [3, 8], strides = [1, 1]} : vector<3x24xf32> to vector<3x8xf32>
    %31 = vector.extract_strided_slice %13 {offsets = [0, 16], sizes = [3, 8], strides = [1, 1]} : vector<3x24xf32> to vector<3x8xf32>
    %32 = arith.mulf %21, %31 : vector<3x8xf32>
    %33 = arith.addf %30, %32 : vector<3x8xf32>
    %34 = math.tanh %33 : vector<3x8xf32>
    %cst_14 = arith.constant 1.000000e+00 : f32
    %35 = vector.broadcast %cst_14 : f32 to vector<3x8xf32>
    %36 = arith.subf %35, %29 : vector<3x8xf32>
    %37 = arith.mulf %36, %34 : vector<3x8xf32>
    %38 = arith.mulf %29, %0 : vector<3x8xf32>
    %39 = arith.addf %37, %38 : vector<3x8xf32>
    %c0_15 = arith.constant 0 : index
    %c0_16 = arith.constant 0 : index
    %40 = vector.load %arg5[%c0_15, %c0_16] : memref<3x8xf32, #tpu.memory_space<vmem>>, vector<3x8xf32>
    tpu.vector_store %arg5[%c0_15, %c0_16], %39 {strides = array<i32>} : memref<3x8xf32, #tpu.memory_space<vmem>>, vector<3x8xf32>,
    return
  }
}

</mosaic_0001>

<bundles_post_ra>
// kernel: _gru_cell_pallas.1
= control target key start
LH: loop header
LB: loop body
LE: loop exit
PB: predicated region body
PF: predicated region fallthrough
CT: control target
= control target key end

     0   :  { %10 = vsyncpa [#allocation3], 0  ;;  %s487_s0 = inlined_call_operand.hbm [shape: f32[3,4], index: 0, kind: input, shape index: {}]   ;;  %s488_s1 = inlined_call_operand.hbm [shape: f32[3,8], index: 1, kind: input, shape index: {}]   ;;  %s489_s2 = inlined_call_operand.hbm [shape: f32[4,24], index: 2, kind: input, shape index: {}]   ;;  %s490_s3 = inlined_call_operand.hbm [shape: f32[8,24], index: 3, kind: input, shape index: {}]   ;;  %s491_s4 = inlined_call_operand.vmem [shape: f32[2,24], index: 4, kind: input, shape index: {}]   ;;  %s492_s5 = inlined_call_operand.hbm [shape: f32[3,8], index: 5, kind: output, shape index: {}]  }
   0x1   :  { %11 = vsyncpa [#allocation6], 0 }
   0x2   :  { %12 = vsyncpa [#allocation9], 0 }
   0x3   :  { %13 = vsyncpa [#allocation4], 0  ;;  %s428_s18 = smov [#allocation5]   ;;  %s429_s20 = smov [#allocation2]  }
   0x4   :  { %s30_s19 = sshll.u32 %s428_s18, 4  ;;  %s20_s21 = sshll.u32 %s429_s20, 4  ;;  %s31_s19 = int_to_ptr.vmem [resolvable:$true] %s30_s19  ;;  %s21_s21 = int_to_ptr.vmem [resolvable:$true] %s20_s21 }
   0x5   :  { %s328_s22 = scalar_lea.vmem %s31_s19, 64  ;;  %p333_p1 = scmp.lt.s32.totalorder %s31_s19, %s31_s19 }
   0x6   :  { %p329_p0 = scmp.ne.s32.totalorder %s31_s19, %s328_s22  ;;  %p334_p2 = scmp.lt.s32.totalorder %s328_s22, %s328_s22 }
   0x8   :  { %p335_p3 = por %p334_p2, %p333_p1 }
   0xa   :  { %p336_p4 = pnand %p335_p3, %p329_p0 }
   0xc   :  { %339 = shalt.err (!%p336_p4)
}
   0xd   :  { %33 = dma.hbm_to_vmem [thread:$0]  %s488_s1, 64, %s31_s19, [#allocation6]  }
   0xe   :  { %s348_s25 = scalar_lea.vmem %s21_s21, 64  ;;  %p353_p6 = scmp.lt.s32.totalorder %s21_s21, %s21_s21 }
   0xf   :  { %p349_p5 = scmp.ne.s32.totalorder %s21_s21, %s348_s25  ;;  %p354_p7 = scmp.lt.s32.totalorder %s348_s25, %s348_s25 }
  0x11   :  { %p355_p8 = por %p354_p7, %p353_p6 }
  0x13   :  { %p356_p9 = pnand %p355_p8, %p349_p5 }
  0x15   :  { %359 = shalt.err (!%p356_p9)
}
  0x16   :  { %23 = dma.hbm_to_vmem [thread:$0]  %s487_s0, 64, %s21_s21, [#allocation3]  }
  0x17   :  { %s430_s28 = smov [#allocation7]   ;;  %s431_s30 = smov [#allocation8]  }
  0x18   :  { %s40_s29 = sshll.u32 %s430_s28, 4  ;;  %s50_s6 = sshll.u32 %s431_s30, 4  ;;  %s41_s29 = int_to_ptr.vmem [resolvable:$true] %s40_s29  ;;  %s51_s6 = int_to_ptr.vmem [resolvable:$true] %s50_s6 }
  0x19   :  { %s368_s7 = scalar_lea.vmem %s41_s29, 64  ;;  %p373_p11 = scmp.lt.s32.totalorder %s41_s29, %s41_s29 }
  0x1a   :  { %p369_p10 = scmp.ne.s32.totalorder %s41_s29, %s368_s7  ;;  %p374_p12 = scmp.lt.s32.totalorder %s368_s7, %s368_s7 }
  0x1c   :  { %p375_p13 = por %p374_p12, %p373_p11 }
  0x1e   :  { %p376_p0 = pnand %p375_p13, %p369_p10 }
  0x20   :  { %379 = shalt.err (!%p376_p0)
}
  0x21   :  { %43 = dma.hbm_to_vmem [thread:$0]  %s489_s2, 64, %s41_s29, [#allocation6]  }
  0x22   :  { %s388_s9 = scalar_lea.vmem %s51_s6, 128  ;;  %p393_p2 = scmp.lt.s32.totalorder %s51_s6, %s51_s6 }
  0x23   :  { %p389_p1 = scmp.ne.s32.totalorder %s51_s6, %s388_s9  ;;  %p394_p3 = scmp.lt.s32.totalorder %s388_s9, %s388_s9 }
  0x25   :  { %p395_p4 = por %p394_p3, %p393_p2 }
  0x27   :  { %p396_p5 = pnand %p395_p4, %p389_p1 }
  0x29   :  { %399 = shalt.err (!%p396_p5)
}
  0x2a   :  { %53 = dma.hbm_to_vmem [thread:$0]  %s490_s3, 128, %s51_s6, [#allocation9]  }
  0x2b   :  { %420 = dma.done.wait [#allocation3], 64  }
  0x2c   :  { %421 = vsyncadd [#allocation3], 4294967232 }
  0x2d   :  { %422 = dma.done.wait [#allocation6], 128  }
  0x2e   :  { %423 = vsyncadd [#allocation6], 4294967168 }
  0x2f   :  { %424 = dma.done.wait [#allocation9], 128  }
  0x30   :  { %425 = vsyncadd [#allocation9], 4294967168  ;;  %v432_v0 = vmov 0.0   ;;  %vm433_vm0 = vmmov 0   ;;  %vm80_vm1 = vcmask 1043456   ;;  %vm76_vm2 = vcmask 31744  }
  0x31   :  { %293 = vmatprep.subr.mxu0 %v432_v0  ;;  %298 = vmatprep.subr.mxu1 %v432_v0  ;;  %vm159_vm3 = vcmask 64512   ;;  %v71_v1 = vld [vmem:[#allocation7] sm:$0xf]  ;;  %v154_v2 = vld [vmem:[#allocation8] sm:$0xff]  ;;  %v70_v3 = vld [vmem:[#allocation2] sm:$0x7]  ;;  %v72_v5 = vlaneseq }
  0x32   :  { %295 = vmatprep.mubr.msk.f32.mxu0 %vm433_vm0, %v432_v0  ;;  %300 = vmatprep.mubr.msk.f32.mxu1 %vm433_vm0, %v432_v0  ;;  %v68_v4 = vld [vmem:[#allocation5] sm:$0x7]  ;;  %v69_v9 = vld [vmem:[%s491_s4] sm:$0x3]  ;;  %s434_s11 = smov 112   ;;  %s435_s4 = smov 16  }
  0x33   :  { %294 = vmatpush3.msk.msra.mxu0 %vm80_vm1, %v71_v1  ;;  %299 = vmatpush3.msra.mxu1 %v154_v2  ;;  %v73_v6 = vshrl.u32 %v72_v5, 7  ;;  %s436_s12 = smov 120   ;;  %s437_s13 = smov 8   ;;  %vm266_vm4 = vcmask 59392  }
  0x34   :  { %296 = vmatmul.mubr.msk.f32.vlgmr.msra.gmra.mxu0 %vm76_vm2, %v70_v3  ;;  %301 = vmatmul.mubr.msk.f32.vlgmr.msra.gmra.mxu1 %vm159_vm3, %v68_v4  ;;  %s438_s14 = smov [#allocation10]  }
  0x35   :  { %v74_v7 = vsub.s32 0, %v73_v6  ;;  %v157_v8 = vsub.s32 1, %v73_v6  ;;  %s274_s15 = sshll.u32 %s438_s14, 4  ;;  %s275_s15 = int_to_ptr.vmem [resolvable:$true] %s274_s15 }
  0x36   :  { %s400_s16 = scalar_lea.vmem %s275_s15, 64  ;;  %p405_p7 = scmp.lt.s32.totalorder %s275_s15, %s275_s15 }
  0x37   :  { %v75_v10 = vrot.slane %v69_v9, %v74_v7  ;;  %v158_v11 = vrot.slane %v69_v9, %v157_v8  ;;  %p401_p6 = scmp.ne.s32.totalorder %s275_s15, %s400_s16  ;;  %p406_p8 = scmp.lt.s32.totalorder %s400_s16, %s400_s16 }
  0x39   :  { %p407_p9 = por %p406_p8, %p405_p7 }
  0x3b   :  { %p408_p10 = pnand %p407_p9, %p401_p6 }
  0xf4   :  { %v150_v12 = vpop.f32.mrf.mxu0  ;;  %v229_v13 = vpop.f32.mrf.mxu1 }
  0xf5   :  { %v151_v14 = vadd.f32 %v150_v12, %v75_v10  ;;  %v230_v15 = vadd.f32 %v229_v13, %v158_v11 }
  0xf6   :  { %v302_v16 = vpop.f32.mrf.mxu1  ;;  %v297_v17 = vpop.f32.mrf.mxu0 }
  0xf7   :  { %241 = vrot.lane.b32.xlu0 %v230_v15, %s434_s11  ;;  %v233_v18 = vadd.f32 %v230_v15, %v151_v14 }
  0xf9   :  { %v288_v19 = vmul.f32 -1.442695, %v233_v18 }
  0xfb   :  { %314 = vpow2.f32 %v288_v19 }
 0x108   :  { %v315_v20 = vpop.eup %314 }
 0x109   :  { %v237_v21 = vadd.f32 1.0, %v315_v20 }
 0x10b   :  { %316 = vrcp.f32 %v237_v21 }
 0x118   :  { %v317_v22 = vpop.eup %316 }
 0x119   :  { %v251_v29 = vsub.f32 1.0, %v317_v22 }
 0x169   :  { %v242_v23 = vpop.permute.xlu0 %241 }
 0x16a   :  { %v244_v24 = vmul.f32 %v317_v22, %v242_v23 }
 0x16c   :  { %246 = vrot.lane.b32.xlu0 %v244_v24, %s435_s4 }
 0x1de   :  { %v247_v25 = vpop.permute.xlu0 %246 }
 0x1df   :  { %v249_v26 = vadd.f32 %v247_v25, %v151_v14 }
 0x1e1   :  { %318 = vtanh.f32 %v249_v26 }
 0x1ee   :  { %v319_v27 = vpop.eup %318 }
 0x1ef   :  { %253 = vrot.lane.b32.xlu1 %v319_v27, %s436_s12 }
 0x1f3   :  { %257 = vrot.lane.b32.xlu1 %v68_v4, %s437_s13 }
 0x261   :  { %v254_v28 = vpop.permute.xlu1 %253 }
 0x262   :  { %v256_v31 = vmul.f32 %v254_v28, %v251_v29 }
 0x265   :  { %v258_v30 = vpop.permute.xlu1 %257 }
 0x266   :  { %v260_v32 = vmul.f32 %v317_v22, %v258_v30 }
 0x268   :  { %v261_v33 = vadd.f32 %v260_v32, %v256_v31 }
 0x26a   :  { %263 = vrot.lane.b32.xlu0 %v261_v33, %s436_s12 }
 0x2dc   :  { %v264_v34 = vpop.permute.xlu0 %263 }
 0x2dd   :  { %267 = vst.msk [vmem:[#allocation10] sm:$0x7] %vm266_vm4, %v264_v34 }
 0x2de   :  { %411 = shalt.err (!%p408_p10)
}
 0x2df   :  { %277 = dma.vmem_to_hbm [thread:$0]  %s275_s15, 64, %s492_s5, [#allocation4]  }
 0x2e0   :  { %426 = dma.done.wait [#allocation4], 64  }
 0x2e1   :  { %427 = vsyncadd [#allocation4], 4294967232 }
 0x2e2   :  { %281 = vsyncpa [#allocation3], 1 }
 0x2e3   :  { %282 = vsyncpa [#allocation6], 1 }
 0x2e4   :  { %283 = vsyncpa [#allocation9], 1 }
 0x2e5   :  { %284 = vsyncpa [#allocation4], 1 }

</bundles_post_ra>
